<compile_context>
chip_gen: v6e
topology: v6e:2x2x1
jax: 0.10.0
libtpu: 0.0.40
codegen_flags: <defaults>
</compile_context>

<pallas_src>
import functools

import jax
import jax.numpy as jnp
from jax.experimental import pallas as pl
from jax.experimental.pallas import tpu as pltpu


def _round_up(n, m):
    return ((n + m - 1) // m) * m


def actor_critic_kernel(x_ref, w1_ref, b1_ref, w2_ref, b2_ref, out_ref):
    """Fused actor-critic forward for one batch tile.

    x_ref  : (TB, D)   bf16 observations
    w1_ref : (D, 2H)   bf16 [policy | value] first-layer weights
    b1_ref : (1, 2H)   f32  [policy | value] first-layer biases
    w2_ref : (2H, 128) bf16 block-diagonal second layer (logits cols 0..A-1,
                       value col A, exact zeros elsewhere)
    b2_ref : (1, 128)  f32  packed second-layer bias
    out_ref: (TB, 128) f32  lane-dense packed output
    """
    # Fused first layer for both heads: one MXU pass, f32 accumulation.
    h = jnp.dot(x_ref[...], w1_ref[...], preferred_element_type=jnp.float32)
    h = jnp.maximum(h + b1_ref[...], 0.0)                       # f32 bias+ReLU

    # Block-diagonal second layer: logits and value in one MXU pass.
    y = jnp.dot(h.astype(w2_ref.dtype), w2_ref[...],
                preferred_element_type=jnp.float32)              # (TB, 128)
    out_ref[...] = (y + b2_ref[...]).astype(out_ref.dtype)


def pack_params(params, *, compute_dtype=jnp.bfloat16):
    """One-time packing of the two heads into one fused network.

    Done once at init (hoisted out of the hot forward):
      first layer : W1 = [wp1 | wv1] (D, 2H),  b1 = [bp1 | bv1] (1, 2H)
      second layer: block-diagonal W2 (2H, OUT_PAD): wp2 in rows 0..H-1 /
                    cols 0..A-1, wv2 in rows H..2H-1 / col A, exact zeros
                    elsewhere so the value lane is never contaminated.
    Returns (packed_dict, n_actions).
    """
    H = params["wp1"].shape[1]
    A = params["wp2"].shape[1]
    out_pad = _round_up(A + 1, 128)

    w1 = jnp.concatenate([params["wp1"], params["wv1"]], axis=1)      # (D, 2H)
    b1 = jnp.concatenate([params["bp1"], params["bv1"]], axis=1)      # (1, 2H)

    w2 = jnp.zeros((2 * H, out_pad), jnp.float32)
    w2 = w2.at[:H, :A].set(params["wp2"])                             # logits block
    w2 = w2.at[H:, A:A + 1].set(params["wv2"])                        # value column
    b2 = jnp.zeros((1, out_pad), jnp.float32)
    b2 = b2.at[:, :A].set(params["bp2"])
    b2 = b2.at[:, A:A + 1].set(params["bv2"])

    packed = {
        "w1": w1.astype(compute_dtype),     # bf16 operands halve weight DMA
        "b1": b1.astype(jnp.float32),       # biases stay f32 (epilogue accuracy)
        "w2": w2.astype(compute_dtype),     # zeros stay exact in bf16
        "b2": b2.astype(jnp.float32),
    }
    packed = jax.device_put(packed)         # materialize once, reuse every call
    return packed, A


def _choose_batch_tile(B, batch_tile):
    """Tile that minimizes padded rows under the cap; >= 2 grid steps when
    B allows so the 'parallel' axis feeds both v7x TensorCores."""
    n_steps = -(-B // batch_tile)
    if n_steps == 1 and B > 8:
        n_steps = 2
    tb = _round_up(-(-B // n_steps), 8)
    return max(tb, 8)


@functools.partial(jax.jit, static_argnames=("n_actions", "batch_tile"))
def actor_critic_forward(x, packed, *, n_actions, batch_tile=4096):
    """Returns (policy_logits, value) exactly like ActorCritic.forward."""
    B, D = x.shape
    w1, b1, w2, b2 = packed["w1"], packed["b1"], packed["w2"], packed["b2"]
    H2 = w1.shape[1]                 # 2H
    out_pad = w2.shape[1]            # 128-lane packed output width
    A = n_actions

    # bf16 input stream (f32 accumulation inside the kernel keeps accuracy).
    x = x.astype(w1.dtype)

    # Batch tiling: minimize padding, keep tiles well inside scoped VMEM.
    tb = _choose_batch_tile(B, batch_tile)
    Bp = _round_up(B, tb)
    if Bp != B:
        x = jnp.pad(x, ((0, Bp - B), (0, 0)))
    nb = Bp // tb

    # Cost estimate with physical (lane-padded to 128) layouts.
    lane = 128
    bytes_accessed = (
        Bp * max(D, lane) * 2                                   # x stream (bf16)
        + D * max(H2, lane) * 2 + H2 * out_pad * 2              # weights (bf16)
        + max(H2, lane) * 4 + out_pad * 4                       # biases (f32)
        + Bp * out_pad * 4                                      # output slab (f32)
    )
    flops = 2 * Bp * (D * H2 + H2 * out_pad)

    packed_out = pl.pallas_call(
        actor_critic_kernel,
        out_shape=jax.ShapeDtypeStruct((Bp, out_pad), jnp.float32),
        grid=(nb,),
        in_specs=[
            pl.BlockSpec((tb, D), lambda i: (i, 0)),            # x tile (streams)
            pl.BlockSpec((D, H2), lambda i: (0, 0)),            # weights stay
            pl.BlockSpec((1, H2), lambda i: (0, 0)),            #   VMEM-resident
            pl.BlockSpec((H2, out_pad), lambda i: (0, 0)),      #   (constant
            pl.BlockSpec((1, out_pad), lambda i: (0, 0)),       #    index_map)
        ],
        out_specs=pl.BlockSpec((tb, out_pad), lambda i: (i, 0)),
        compiler_params=pltpu.CompilerParams(
            dimension_semantics=("parallel",),                  # 2 TCs on v7x
            vmem_limit_bytes=32 * 1024 * 1024),                 # covers v5e's 16 MiB default
        cost_estimate=pl.CostEstimate(
            flops=flops, transcendentals=0, bytes_accessed=bytes_accessed),
    )(x, w1, b1, w2, b2)

    # TODO(synk): downstream consumers that can read the packed (B, 128) slab
    # directly (e.g. softmax over lanes 0..A-1) should do so to skip these
    # two slice copies; kept here to match the (logits, value) API.
    logits = packed_out[:B, :A]
    value = packed_out[:B, A:A + 1]
    return logits, value


def init_params(key, obs_dim, hidden, n_actions):
    """Deterministic synthetic parameters (no checkpoint load)."""
    ks = jax.random.split(key, 8)
    scale = 0.1
    return {
        "wp1": scale * jax.random.normal(ks[0], (obs_dim, hidden), jnp.float32),
        "bp1": scale * jax.random.normal(ks[1], (1, hidden), jnp.float32),
        "wp2": scale * jax.random.normal(ks[2], (hidden, n_actions), jnp.float32),
        "bp2": scale * jax.random.normal(ks[3], (1, n_actions), jnp.float32),
        "wv1": scale * jax.random.normal(ks[4], (obs_dim, hidden), jnp.float32),
        "bv1": scale * jax.random.normal(ks[5], (1, hidden), jnp.float32),
        "wv2": scale * jax.random.normal(ks[6], (hidden, 1), jnp.float32),
        "bv2": scale * jax.random.normal(ks[7], (1, 1), jnp.float32),
    }


def reference_forward(x, p):
    """Pure-JAX f32 reference of the same ActorCritic forward."""
    hp = jnp.maximum(x @ p["wp1"] + p["bp1"], 0.0)
    logits = hp @ p["wp2"] + p["bp2"]
    hv = jnp.maximum(x @ p["wv1"] + p["bv1"], 0.0)
    val = hv @ p["wv2"] + p["bv2"]
    return logits, val


if __name__ == "__main__":
    key = jax.random.PRNGKey(0)
    k_x, k_p = jax.random.split(key)

    batch, obs_dim, hidden, n_actions = 8, 32, 32, 8
    x = jax.random.normal(k_x, (batch, obs_dim), jnp.float32)
    params = init_params(k_p, obs_dim, hidden, n_actions)

    # One-time packing / casting, hoisted out of the hot forward.
    packed, A = pack_params(params)

    logits, value = actor_critic_forward(x, packed, n_actions=A)
    jax.block_until_ready((logits, value))

    ref_logits, ref_value = reference_forward(x, params)
    assert logits.shape == (batch, n_actions)
    assert value.shape == (batch, 1)
    # bf16 operands (f32 accumulation) -> loosened tolerances vs f32 reference.
    assert jnp.allclose(logits, ref_logits, atol=2e-2, rtol=2e-2)
    assert jnp.allclose(value, ref_value, atol=2e-2, rtol=2e-2)

    # Also exercise the multi-step grid path (2 tiles + row padding).
    big_B = 1037
    xb = jax.random.normal(jax.random.PRNGKey(1), (big_B, obs_dim), jnp.float32)
    lb, vb = actor_critic_forward(xb, packed, n_actions=A)
    jax.block_until_ready((lb, vb))
    rlb, rvb = reference_forward(xb, params)
    assert lb.shape == (big_B, n_actions) and vb.shape == (big_B, 1)
    assert jnp.allclose(lb, rlb, atol=2e-2, rtol=2e-2)
    assert jnp.allclose(vb, rvb, atol=2e-2, rtol=2e-2)

    print("KERNEL_OK")
</pallas_src>

<mosaic_0001>
module attributes {stable_mosaic.version = 11 : i64} {
  func.func @actor_critic_kernel(%arg0: i32, %arg1: memref<8x32xbf16, #tpu.memory_space<vmem>>, %arg2: memref<32x64xbf16, #tpu.memory_space<vmem>>, %arg3: memref<1x64xf32, #tpu.memory_space<vmem>>, %arg4: memref<64x128xbf16, #tpu.memory_space<vmem>>, %arg5: memref<1x128xf32, #tpu.memory_space<vmem>>, %arg6: memref<8x128xf32, #tpu.memory_space<vmem>>) attributes {dimension_semantics = [#tpu.dimension_semantics<parallel>], iteration_bounds = array<i64: 1>, scalar_prefetch = 0 : i64, scratch_operands = 0 : i64, tpu.core_type = #tpu.core_type<tc>, window_params = [{transform_indices = @transform_0, window_bounds = array<i64: 8, 32>}, {pipeline_mode = #tpu.pipeline_mode<synchronous>, transform_indices = @transform_1, window_bounds = array<i64: 32, 64>}, {pipeline_mode = #tpu.pipeline_mode<synchronous>, transform_indices = @transform_2, window_bounds = array<i64: 1, 64>}, {pipeline_mode = #tpu.pipeline_mode<synchronous>, transform_indices = @transform_3, window_bounds = array<i64: 64, 128>}, {pipeline_mode = #tpu.pipeline_mode<synchronous>, transform_indices = @transform_4, window_bounds = array<i64: 1, 128>}, {transform_indices = @transform_5, window_bounds = array<i64: 8, 128>}]} {
    %c0 = arith.constant 0 : index
    %c0_0 = arith.constant 0 : index
    %0 = vector.load %arg1[%c0, %c0_0] : memref<8x32xbf16, #tpu.memory_space<vmem>>, vector<8x32xbf16>
    %c0_1 = arith.constant 0 : index
    %c0_2 = arith.constant 0 : index
    %1 = vector.load %arg2[%c0_1, %c0_2] : memref<32x64xbf16, #tpu.memory_space<vmem>>, vector<32x64xbf16>
    %cst = arith.constant dense<0.000000e+00> : vector<8x64xf32>
    %2 = tpu.matmul %0, %1, %cst {dimension_numbers = #tpu.dot_dimension_numbers<[1], [0], [0], [1], [0, 0, 1, 1], [], []>} : vector<8x32xbf16>, vector<32x64xbf16>, vector<8x64xf32> -> vector<8x64xf32>
    %c0_3 = arith.constant 0 : index
    %c0_4 = arith.constant 0 : index
    %3 = vector.load %arg3[%c0_3, %c0_4] : memref<1x64xf32, #tpu.memory_space<vmem>>, vector<1x64xf32>
    %4 = vector.broadcast %3 : vector<1x64xf32> to vector<8x64xf32>
    %5 = arith.addf %2, %4 : vector<8x64xf32>
    %cst_5 = arith.constant 0.000000e+00 : f32
    %6 = vector.broadcast %cst_5 : f32 to vector<8x64xf32>
    %7 = arith.maximumf %5, %6 : vector<8x64xf32>
    %8 = arith.truncf %7 : vector<8x64xf32> to vector<8x64xbf16>
    %c0_6 = arith.constant 0 : index
    %c0_7 = arith.constant 0 : index
    %9 = vector.load %arg4[%c0_6, %c0_7] : memref<64x128xbf16, #tpu.memory_space<vmem>>, vector<64x128xbf16>
    %cst_8 = arith.constant dense<0.000000e+00> : vector<8x128xf32>
    %10 = tpu.matmul %8, %9, %cst_8 {dimension_numbers = #tpu.dot_dimension_numbers<[1], [0], [0], [1], [0, 0, 1, 1], [], []>} : vector<8x64xbf16>, vector<64x128xbf16>, vector<8x128xf32> -> vector<8x128xf32>
    %c0_9 = arith.constant 0 : index
    %c0_10 = arith.constant 0 : index
    %11 = vector.load %arg5[%c0_9, %c0_10] : memref<1x128xf32, #tpu.memory_space<vmem>>, vector<1x128xf32>
    %12 = vector.broadcast %11 : vector<1x128xf32> to vector<8x128xf32>
    %13 = arith.addf %10, %12 : vector<8x128xf32>
    %c0_11 = arith.constant 0 : index
    %c0_12 = arith.constant 0 : index
    %14 = vector.load %arg6[%c0_11, %c0_12] : memref<8x128xf32, #tpu.memory_space<vmem>>, vector<8x128xf32>
    tpu.vector_store %arg6[%c0_11, %c0_12], %13 {strides = array<i32>} : memref<8x128xf32, #tpu.memory_space<vmem>>, vector<8x128xf32>,
    return
  }
  func.func @transform_0(%arg0: i32) -> (i32, i32) {
    %c0_i32 = arith.constant 0 : i32
    %c0_i32_0 = arith.constant 0 : i32
    return %arg0, %c0_i32 : i32, i32
  }
  func.func @transform_1(%arg0: i32) -> (i32, i32) {
    %c0_i32 = arith.constant 0 : i32
    %c0_i32_0 = arith.constant 0 : i32
    %c0_i32_1 = arith.constant 0 : i32
    return %c0_i32, %c0_i32_0 : i32, i32
  }
  func.func @transform_2(%arg0: i32) -> (i32, i32) {
    %c0_i32 = arith.constant 0 : i32
    %c0_i32_0 = arith.constant 0 : i32
    %c0_i32_1 = arith.constant 0 : i32
    return %c0_i32, %c0_i32_0 : i32, i32
  }
  func.func @transform_3(%arg0: i32) -> (i32, i32) {
    %c0_i32 = arith.constant 0 : i32
    %c0_i32_0 = arith.constant 0 : i32
    %c0_i32_1 = arith.constant 0 : i32
    return %c0_i32, %c0_i32_0 : i32, i32
  }
  func.func @transform_4(%arg0: i32) -> (i32, i32) {
    %c0_i32 = arith.constant 0 : i32
    %c0_i32_0 = arith.constant 0 : i32
    %c0_i32_1 = arith.constant 0 : i32
    return %c0_i32, %c0_i32_0 : i32, i32
  }
  func.func @transform_5(%arg0: i32) -> (i32, i32) {
    %c0_i32 = arith.constant 0 : i32
    %c0_i32_0 = arith.constant 0 : i32
    return %arg0, %c0_i32 : i32, i32
  }
}

</mosaic_0001>

<bundles_post_ra>
// kernel: actor_critic_forward.1
= control target key start
LH: loop header
LB: loop body
LE: loop exit
PB: predicated region body
PF: predicated region fallthrough
CT: control target
= control target key end

     0   :  { %10 = vsyncpa [#allocation3], 0  ;;  %s358_s0 = inlined_call_operand.vmem [shape: bf16[8,32], index: 0, kind: input, shape index: {}]   ;;  %s359_s1 = inlined_call_operand.vmem [shape: bf16[32,64], index: 1, kind: input, shape index: {}]   ;;  %s360_s2 = inlined_call_operand.vmem [shape: f32[1,64], index: 2, kind: input, shape index: {}]   ;;  %s361_s3 = inlined_call_operand.hbm [shape: bf16[64,128], index: 3, kind: input, shape index: {}]   ;;  %s362_s4 = inlined_call_operand.hbm [shape: f32[1,128], index: 4, kind: input, shape index: {}]   ;;  %s363_s5 = inlined_call_operand.vmem [shape: f32[8,128], index: 5, kind: output, shape index: {}]  }
   0x1   :  { %11 = vsyncpa [#allocation5], 0  ;;  %s301_s18 = smov [#allocation2]  }
   0x2   :  { %s23_s19 = sshll.u32 %s301_s18, 4  ;;  %s24_s19 = int_to_ptr.vmem [resolvable:$true] %s23_s19 }
   0x3   :  { %s265_s20 = scalar_lea.vmem %s24_s19, 512  ;;  %p270_p1 = scmp.lt.s32.totalorder %s24_s19, %s24_s19 }
   0x4   :  { %p266_p0 = scmp.ne.s32.totalorder %s24_s19, %s265_s20  ;;  %p271_p2 = scmp.lt.s32.totalorder %s265_s20, %s265_s20 }
   0x6   :  { %p272_p3 = por %p271_p2, %p270_p1 }
   0x8   :  { %p273_p4 = pnand %p272_p3, %p266_p0 }
   0xa   :  { %276 = shalt.err (!%p273_p4)
}
   0xb   :  { %s302_s21 = smov 64   ;;  %s303_s22 = smov 4  }
   0xc   :  { %29 = dma.hbm_to_vmem [thread:$0]  %s361_s3, 512, %s24_s19, [#allocation3], %s302_s21, %s302_s21, %s303_s22  }
   0xd   :  { %s304_s25 = smov [#allocation4]  }
   0xe   :  { %s36_s26 = sshll.u32 %s304_s25, 4  ;;  %s37_s26 = int_to_ptr.vmem [resolvable:$true] %s36_s26 }
   0xf   :  { %s285_s27 = scalar_lea.vmem %s37_s26, 16  ;;  %s289_s28 = scalar_lea.vmem %s37_s26, 32 }
  0x10   :  { %p286_p5 = scmp.ne.s32.totalorder %s37_s26, %s285_s27  ;;  %p290_p6 = scmp.lt.s32.totalorder %s37_s26, %s37_s26 }
  0x11   :  { %p291_p7 = scmp.lt.s32.totalorder %s289_s28, %s285_s27 }
  0x13   :  { %p292_p8 = por %p291_p7, %p290_p6 }
  0x15   :  { %p293_p9 = pnand %p292_p8, %p286_p5 }
  0x17   :  { %296 = shalt.err (!%p293_p9)
}
  0x18   :  { %39 = dma.hbm_to_vmem [thread:$0]  %s362_s4, 16, %s37_s26, [#allocation5]  }
  0x19   :  { %297 = dma.done.wait [#allocation3], 512  }
  0x1a   :  { %298 = vsyncadd [#allocation3], 4294966784 }
  0x1b   :  { %299 = dma.done.wait [#allocation5], 16  }
  0x1c   :  { %300 = vsyncadd [#allocation5], 4294967280  ;;  %v305_v0 = vmov 0.0   ;;  %vm306_vm0 = vmmov 0   ;;  %v251_v1 = vld [vmem:[%s359_s1 + $0x8] sm:$0xff]   ;;  %v252_v2 = vld [vmem:[%s359_s1] sm:$0xff]  }
  0x1d   :  { %225 = vmatprep.subr.bf16.mxu0 %v305_v0  ;;  %229 = vmatprep.mubr.msk.bf16.mxu0 %vm306_vm0, %v305_v0  ;;  %v253_v3 = vld [vmem:[#allocation2 + $0x18] sm:$0xff]   ;;  %v254_v4 = vld [vmem:[#allocation2 + $0x10] sm:$0xff]   ;;  %v47_v5 = vld [vmem:[%s358_s0] sm:$0xf]  ;;  %vm71_vm1 = vcmask 261120   ;;  %vm156_vm2 = vcmask 523264  }
  0x1e   :  { %233 = vmatprep.subr.bf16.mxu1 %v305_v0  ;;  %241 = vmatprep.mubr.msk.bf16.mxu1 %vm306_vm0, %v305_v0  ;;  %v255_v6 = vld [vmem:[#allocation2 + $0x8] sm:$0xff]   ;;  %v256_v7 = vld [vmem:[#allocation2] sm:$0xff]  }
  0x1f   :  { %226 = vmatpush3.bf16.msra.mxu0 %v251_v1  ;;  %234 = vmatpush3.bf16.msra.mxu1 %v253_v3  ;;  %v207_v8 = vld [vmem:[%s360_s2] ss:$0 sm:$0xff] }
  0x20   :  { %227 = vmatprep.subr.bf16.mxu0 %v305_v0  ;;  %235 = vmatprep.subr.bf16.mxu1 %v305_v0  ;;  %v211_v16 = vld [vmem:[#allocation4] ss:$0 sm:$0xff] }
  0x23   :  { %228 = vmatpush3.bf16.msra.mxu0 %v252_v2  ;;  %236 = vmatpush3.bf16.msra.mxu1 %v254_v4 }
  0x24   :  { %237 = vmatprep.subr.bf16.mxu1 %v305_v0 }
  0x26   :  { %230 = vmatmul.mubr.msk.bf16.vlgmr.msra.gmra.mxu0 %vm71_vm1, %v47_v5 }
  0x27   :  { %238 = vmatpush3.bf16.msra.mxu1 %v255_v6 }
  0x28   :  { %239 = vmatprep.subr.bf16.mxu1 %v305_v0 }
  0x2b   :  { %240 = vmatpush3.bf16.msra.mxu1 %v256_v7 }
  0xe6   :  { %v109_v9 = vpop.f32.mrf.mxu0 }
  0xe7   :  { %v110_v10 = vadd.f32 %v207_v8, %v109_v9 }
  0xe8   :  { %v231_v11 = vpop.f32.mrf.mxu0 }
  0xe9   :  { %v115_v12 = vmax.f32 %v110_v10, 0.0 }
  0xea   :  { %v112_v13 = vpop.f32.mrf.mxu0 }
  0xeb   :  { %v116_v14 = vpack.c.bf16 %v115_v12, %v115_v12 }
  0xec   :  { %v232_v15 = vpop.f32.mrf.mxu0 }
  0xed   :  { %242 = vmatmul.mubr.msk.bf16.vlgmr.msra.gmra.mxu1 %vm156_vm2, %v116_v14 }
 0x1ad   :  { %v194_v17 = vpop.f32.mrf.mxu1 }
 0x1ae   :  { %v195_v18 = vadd.f32 %v211_v16, %v194_v17 }
 0x1af   :  { %v243_v19 = vpop.f32.mrf.mxu1 }
 0x1b0   :  { %200 = vst [vmem:[%s363_s5] sm:$0xff] %v195_v18 }
 0x1b1   :  { %v197_v20 = vpop.f32.mrf.mxu1 }
 0x1b3   :  { %v244_v21 = vpop.f32.mrf.mxu1 }
 0x1b4   :  { %205 = vsyncpa [#allocation3], 1 }
 0x1b5   :  { %206 = vsyncpa [#allocation5], 1 }

</bundles_post_ra>
